<compile_context>
chip_gen: v5e
topology: v5e:2x2
jax: 0.10.0
libtpu: 0.0.40
codegen_flags: <defaults>
</compile_context>

<pallas_src>
import math
import functools

import jax
import jax.numpy as jnp
from jax import lax
from jax.experimental import pallas as pl
from jax.experimental.pallas import tpu as pltpu


# Explicit scoped-VMEM budget: equals the v6e/v7x default, raises v5e's 16 MiB
# default, and stays well inside v7x's 64 MiB physical VMEM.  Actual per-step
# usage of both kernels below is ~1-9 MiB with the default tiles.
_VMEM_LIMIT_BYTES = 32 * 1024 * 1024


# ----------------------------------------------------------------------------
# helpers
# ----------------------------------------------------------------------------
def _sublane_align(dtype):
    """Alignment for second-to-last block dims: 8 (4B), 16 (2B), 32 (1B)."""
    return max(8, 32 // jnp.dtype(dtype).itemsize)


def _pick_tile(dim, target, align):
    """Largest divisor of `dim` that is <= target and a multiple of `align`,
    falling back to the full dim (always a legal block)."""
    if dim <= target:
        return dim
    t = (min(target, dim) // align) * align
    for cand in range(t, 0, -align):
        if dim % cand == 0:
            return cand
    return dim


def _heads_per_block(n_head, dh, min_lanes=128):
    """Smallest head-group so the packed last dim (hg*dh) is lane-dense
    (multiple of `min_lanes`); fall back to all heads (block == full nx)."""
    for hg in range(1, n_head + 1):
        if n_head % hg == 0 and (hg * dh) % min_lanes == 0:
            return hg
    return n_head


# ----------------------------------------------------------------------------
# Conv1D == addmm:  out[M, N] = x[M, K] @ w[K, N] + b[1, N]   (tiled, K-accum)
# ----------------------------------------------------------------------------
def addmm_kernel(x_ref, w_ref, b_ref, o_ref, acc_ref, *, compute_dtype):
    @pl.when(pl.program_id(2) == 0)
    def _():
        acc_ref[...] = jnp.zeros_like(acc_ref)

    x = x_ref[...]
    w = w_ref[...]
    if compute_dtype is not None:
        x = x.astype(compute_dtype)   # bf16 MXU operands, f32 accumulation
        w = w.astype(compute_dtype)
    acc_ref[...] += jnp.dot(x, w, preferred_element_type=jnp.float32)

    @pl.when(pl.program_id(2) == pl.num_programs(2) - 1)
    def _():
        # bias added once, on the final K step only
        o_ref[...] = (acc_ref[...] + b_ref[...].astype(jnp.float32)).astype(o_ref.dtype)


def conv1d(x2d, w, b, *, tm=512, tn=512, tk=512, compute_dtype=None):
    """x2d: [M, K], w: [K, N], b: [N] -> [M, N]  (torch.addmm semantics)."""
    M, K = x2d.shape
    N = w.shape[1]
    tm = _pick_tile(M, tm, _sublane_align(x2d.dtype))
    tk = _pick_tile(K, tk, 128)
    tn = _pick_tile(N, tn, 128)
    b2d = b.reshape(1, N)
    kernel = functools.partial(addmm_kernel, compute_dtype=compute_dtype)
    return pl.pallas_call(
        kernel,
        out_shape=jax.ShapeDtypeStruct((M, N), x2d.dtype),
        grid=(M // tm, N // tn, K // tk),
        in_specs=[
            pl.BlockSpec((tm, tk), lambda i, j, k: (i, k)),
            pl.BlockSpec((tk, tn), lambda i, j, k: (k, j)),
            pl.BlockSpec((1, tn), lambda i, j, k: (0, j)),
        ],
        out_specs=pl.BlockSpec((tm, tn), lambda i, j, k: (i, j)),
        scratch_shapes=[pltpu.VMEM((tm, tn), jnp.float32)],
        compiler_params=pltpu.CompilerParams(
            dimension_semantics=("parallel", "parallel", "arbitrary"),
            vmem_limit_bytes=_VMEM_LIMIT_BYTES,
        ),
    )(x2d, w, b2d)


# ----------------------------------------------------------------------------
# Flash attention: grid (batch, head-block, q-tile, kv-tile), online softmax.
#   s = q @ k^T ; 1/sqrt(dh) folded into q ; causal mask ; softmax ; @ v
# ----------------------------------------------------------------------------
def flash_attn_kernel(q_ref, k_ref, v_ref, o_ref, m_ref, l_ref, acc_ref,
                      *, hg, scale, compute_dtype):
    qi = pl.program_id(2)
    kv = pl.program_id(3)
    tq = q_ref.shape[0]
    tkv = k_ref.shape[0]
    dh = q_ref.shape[1] // hg
    q_start = qi * tq
    kv_start = kv * tkv

    @pl.when(kv == 0)
    def _init():
        m_ref[...] = jnp.full(m_ref.shape, -jnp.inf, dtype=m_ref.dtype)
        l_ref[...] = jnp.zeros_like(l_ref)
        acc_ref[...] = jnp.zeros_like(acc_ref)

    # Causal tile pruning: skip KV tiles strictly above the diagonal
    # (their DMAs are already elided by the clamped kv index_map).
    @pl.when(kv_start <= q_start + (tq - 1))
    def _compute():
        cd = compute_dtype if compute_dtype is not None else q_ref.dtype
        q = q_ref[...]                              # (tq, hg*dh)
        if scale:
            q = q * (1.0 / math.sqrt(dh))           # q-side scale: O(tq*dh)
        q = q.astype(cd)
        k = k_ref[...].astype(cd)                   # (tkv, hg*dh)
        v = v_ref[...].astype(cd)                   # (tkv, hg*dh)

        # Mask only needed when this tile straddles the diagonal.
        needs_mask = (kv_start + (tkv - 1)) > q_start
        neg = jnp.float32(-1e10)

        def _apply_mask(t):
            row = lax.broadcasted_iota(jnp.int32, (tq, tkv), 0) + q_start
            col = lax.broadcasted_iota(jnp.int32, (tq, tkv), 1) + kv_start
            return jnp.where(col <= row, t, neg)

        pv_parts = []
        alpha_parts = []
        for g in range(hg):                          # static unroll, packed heads
            sl = slice(g * dh, (g + 1) * dh)
            s = lax.dot_general(                     # (tq, tkv) f32 scores
                q[:, sl], k[:, sl],
                dimension_numbers=(((1,), (1,)), ((), ())),
                preferred_element_type=jnp.float32,
            )
            s = lax.cond(needs_mask, _apply_mask, lambda t: t, s)

            m_prev = m_ref[g]                                       # (tq, 1)
            m_new = jnp.maximum(m_prev, jnp.max(s, axis=-1, keepdims=True))
            alpha = jnp.exp(m_prev - m_new)          # one exp / row / KV tile
            p = jnp.exp(s - m_new)                   # (tq, tkv)
            l_ref[g] = alpha * l_ref[g] + jnp.sum(p, axis=-1, keepdims=True)
            m_ref[g] = m_new
            pv_parts.append(
                jnp.dot(p.astype(cd), v[:, sl], preferred_element_type=jnp.float32))
            alpha_parts.append(jnp.broadcast_to(alpha, (tq, dh)))

        # Single lane-dense accumulator update over the whole (tq, hg*dh) tile.
        acc_ref[...] = (jnp.concatenate(alpha_parts, axis=-1) * acc_ref[...]
                        + jnp.concatenate(pv_parts, axis=-1))

    @pl.when(kv == pl.num_programs(3) - 1)
    def _finalize():
        inv_l = jnp.concatenate(
            [jnp.broadcast_to(pl.reciprocal(l_ref[g], approx=True), (tq, dh))
             for g in range(hg)], axis=-1)
        o_ref[...] = (acc_ref[...] * inv_l).astype(o_ref.dtype)


def multi_head_attention(q, k, v, *, n_head, scale, q_tile=256, kv_tile=256,
                         compute_dtype=None):
    """q/k/v: [B, T, nx] (head-major packed in the last dim) -> [B, T, nx]."""
    B, T, nx = q.shape
    dh = nx // n_head
    # Lane-dense packed-head blocks; widen to 256 lanes for sub-4B HBM dtypes
    # so each strided K/V DMA row stays >= 512 B contiguous.
    min_lanes = 128 if jnp.dtype(q.dtype).itemsize >= 4 else 256
    hg = _heads_per_block(n_head, dh, min_lanes)     # heads packed per grid step
    hb = n_head // hg                                # head-block grid extent
    sub = _sublane_align(q.dtype)
    tq = _pick_tile(T, q_tile, sub)                  # query tile
    tkv = _pick_tile(T, kv_tile, sub)                # KV tile
    qt = T // tq
    kvt = T // kvt if False else T // tkv

    def q_map(b, h, qi, kv):
        return (b, qi, h)

    def kv_map(b, h, qi, kv):
        # Clamp fully-masked (pruned) steps onto the last useful KV block so
        # the pipeline revisits it instead of DMAing a tile the kernel skips.
        kv_max = (qi * tq + tq - 1) // tkv
        return (b, jnp.minimum(kv, kv_max), h)

    def o_map(b, h, qi, kv):
        return (b, qi, h)

    kernel = functools.partial(flash_attn_kernel, hg=hg, scale=scale,
                               compute_dtype=compute_dtype)
    return pl.pallas_call(
        kernel,
        out_shape=jax.ShapeDtypeStruct((B, T, nx), q.dtype),
        grid=(B, hb, qt, kvt),      # kv innermost: online-softmax reduction axis
        in_specs=[
            pl.BlockSpec((None, tq, hg * dh), q_map),
            pl.BlockSpec((None, tkv, hg * dh), kv_map),
            pl.BlockSpec((None, tkv, hg * dh), kv_map),
        ],
        out_specs=pl.BlockSpec((None, tq, hg * dh), o_map),
        scratch_shapes=[
            pltpu.VMEM((hg, tq, 1), jnp.float32),      # running max  m
            pltpu.VMEM((hg, tq, 1), jnp.float32),      # running sum  l
            pltpu.VMEM((tq, hg * dh), jnp.float32),    # output accumulator
        ],
        compiler_params=pltpu.CompilerParams(
            dimension_semantics=("parallel", "parallel", "parallel", "arbitrary"),
            vmem_limit_bytes=_VMEM_LIMIT_BYTES,
        ),
    )(q, k, v)


# ----------------------------------------------------------------------------
# Full Attention.forward
# ----------------------------------------------------------------------------
def attention_forward(x, params, *, n_head, scale=False, q_tile=256, kv_tile=256,
                      compute_dtype=jnp.bfloat16):
    """x: [B, T, nx].  Returns (a, present) like the PyTorch module.

    present: [2, B, H, T, dh] = stack((key.transpose(-2,-1), value)).
    compute_dtype: MXU operand dtype (default bf16); accumulation and softmax
    stay f32.  Pass None for full-f32 matmuls.
    """
    # TODO(synk): layer_past (KV-cache concat) path not implemented; this
    #             forward corresponds to layer_past=None.
    B, T, nx = x.shape
    dh = nx // n_head

    # c_attn (Conv1D nx -> 3*nx)
    qkv = conv1d(x.reshape(B * T, nx), params["w_attn"], params["b_attn"],
                 compute_dtype=compute_dtype)
    qkv = qkv.reshape(B, T, 3 * nx)
    query, key, value = jnp.split(qkv, 3, axis=2)          # each [B, T, nx]

    # present = stack((key.transpose(-2,-1), value)) -> [2, B, H, T, dh]
    # TODO(synk): the module's [2,B,H,T,dh] layout costs an extra K/V HBM
    #             round-trip; a [2,B,T,H,dh] layout would be a free reshape.
    k4 = key.reshape(B, T, n_head, dh)
    v4 = value.reshape(B, T, n_head, dh)
    present = jnp.stack((jnp.transpose(k4, (0, 2, 1, 3)),
                         jnp.transpose(v4, (0, 2, 1, 3))))

    # attention hot path (Pallas flash kernel); no wrapper transposes
    a = multi_head_attention(query, key, value, n_head=n_head, scale=scale,
                             q_tile=q_tile, kv_tile=kv_tile,
                             compute_dtype=compute_dtype)

    # merge_heads is a free reshape (output already [B, T, nx] head-major)
    a = conv1d(a.reshape(B * T, nx), params["w_proj"], params["b_proj"],
               compute_dtype=compute_dtype)
    return a.reshape(B, T, nx), present


# ----------------------------------------------------------------------------
# Pure-JAX reference (mirrors the PyTorch module) for a sanity check
# ----------------------------------------------------------------------------
def reference_forward(x, params, *, n_head, scale=False):
    B, T, nx = x.shape
    dh = nx // n_head
    qkv = x.reshape(B * T, nx) @ params["w_attn"] + params["b_attn"]
    qkv = qkv.reshape(B, T, 3 * nx)
    query, key, value = jnp.split(qkv, 3, axis=2)
    q = jnp.transpose(query.reshape(B, T, n_head, dh), (0, 2, 1, 3))
    kT = jnp.transpose(key.reshape(B, T, n_head, dh), (0, 2, 3, 1))
    v = jnp.transpose(value.reshape(B, T, n_head, dh), (0, 2, 1, 3))
    present = jnp.stack((jnp.swapaxes(kT, -2, -1), v))
    w = jnp.einsum("bhqd,bhdk->bhqk", q, kT)
    if scale:
        w = w / math.sqrt(dh)
    mask = jnp.tril(jnp.ones((T, T), w.dtype))
    w = w * mask - 1e10 * (1.0 - mask)
    w = jax.nn.softmax(w, axis=-1)
    a = jnp.einsum("bhqk,bhkd->bhqd", w, v)
    a = jnp.transpose(a, (0, 2, 1, 3)).reshape(B * T, nx)
    a = a @ params["w_proj"] + params["b_proj"]
    return a.reshape(B, T, nx), present


if __name__ == "__main__":
    # Small configs consistent with the module (nx divisible by n_head):
    #   cfg0: single q/kv tile, f32 operands
    #   cfg1: multiple q + kv tiles -> exercises online softmax, causal
    #         pruning, interior (unmasked) and diagonal (masked) tiles
    #   cfg2: dh=128 -> multiple head blocks; tkv < tq -> fully-masked rows
    #   cfg3: bf16 MXU operands (default compute_dtype), loose tolerance
    configs = [
        # (B, T, nx, n_head, scale, q_tile, kv_tile, compute_dtype, tol)
        (2, 8, 32, 4, False, 256, 256, None, 2e-3),
        (1, 32, 32, 4, True, 8, 8, None, 2e-3),
        (1, 16, 256, 2, True, 16, 8, None, 2e-3),
        (2, 32, 64, 4, True, 16, 16, jnp.bfloat16, 5e-2),
    ]
    key0 = jax.random.PRNGKey(0)
    for idx, (B, T, nx, n_head, scale, q_tile, kv_tile, cdt, tol) in enumerate(configs):
        kx, kw1, kw2, kb1, kb2 = jax.random.split(jax.random.fold_in(key0, idx), 5)
        x = jax.random.normal(kx, (B, T, nx), dtype=jnp.float32)
        params = {
            # Conv1D weights: normal(std=0.02); small nonzero biases to
            # exercise the bias path of the tiled addmm kernel.
            "w_attn": 0.02 * jax.random.normal(kw1, (nx, 3 * nx), dtype=jnp.float32),
            "b_attn": 0.1 * jax.random.normal(kb1, (3 * nx,), dtype=jnp.float32),
            "w_proj": 0.02 * jax.random.normal(kw2, (nx, nx), dtype=jnp.float32),
            "b_proj": 0.1 * jax.random.normal(kb2, (nx,), dtype=jnp.float32),
        }

        a, present = attention_forward(x, params, n_head=n_head, scale=scale,
                                       q_tile=q_tile, kv_tile=kv_tile,
                                       compute_dtype=cdt)
        a = jax.block_until_ready(a)
        present = jax.block_until_ready(present)

        a_ref, present_ref = reference_forward(x, params, n_head=n_head, scale=scale)
        assert a.shape == (B, T, nx)
        assert present.shape == (2, B, n_head, T, nx // n_head)
        assert jnp.allclose(a, a_ref, atol=tol, rtol=tol), f"cfg{idx}: a mismatch"
        assert jnp.allclose(present, present_ref, atol=tol, rtol=tol), \
            f"cfg{idx}: present mismatch"

    print("KERNEL_OK")
</pallas_src>

<mosaic_0001>
module attributes {stable_mosaic.version = 11 : i64} {
  func.func @addmm_kernel(%arg0: i32, %arg1: i32, %arg2: i32, %arg3: memref<16x32xf32, #tpu.memory_space<vmem>>, %arg4: memref<32x96xf32, #tpu.memory_space<vmem>>, %arg5: memref<1x96xf32, #tpu.memory_space<vmem>>, %arg6: memref<16x96xf32, #tpu.memory_space<vmem>>, %arg7: memref<16x96xf32, #tpu.memory_space<vmem>>) attributes {dimension_semantics = [#tpu.dimension_semantics<parallel>, #tpu.dimension_semantics<parallel>, #tpu.dimension_semantics<arbitrary>], iteration_bounds = array<i64: 1, 1, 1>, scalar_prefetch = 0 : i64, scratch_operands = 1 : i64, tpu.core_type = #tpu.core_type<tc>, window_params = [{transform_indices = @transform_0, window_bounds = array<i64: 16, 32>}, {transform_indices = @transform_1, window_bounds = array<i64: 32, 96>}, {transform_indices = @transform_2, window_bounds = array<i64: 1, 96>}, {transform_indices = @transform_3, window_bounds = array<i64: 16, 96>}]} {
    %c0_i32 = arith.constant 0 : i32
    %0 = arith.cmpi eq, %arg2, %c0_i32 : i32
    %1 = arith.extui %0 : i1 to i32
    %c0_i32_0 = arith.constant 0 : i32
    %2 = arith.cmpi ne, %1, %c0_i32_0 : i32
    scf.if %2 {
      %cst_10 = arith.constant 0.000000e+00 : f32
      %12 = vector.broadcast %cst_10 : f32 to vector<16x96xf32>
      %c0_11 = arith.constant 0 : index
      %c0_12 = arith.constant 0 : index
      %13 = vector.load %arg7[%c0_11, %c0_12] : memref<16x96xf32, #tpu.memory_space<vmem>>, vector<16x96xf32>
      tpu.vector_store %arg7[%c0_11, %c0_12], %12 {strides = array<i32>} : memref<16x96xf32, #tpu.memory_space<vmem>>, vector<16x96xf32>,
    } else {
    }
    %c0 = arith.constant 0 : index
    %c0_1 = arith.constant 0 : index
    %3 = vector.load %arg3[%c0, %c0_1] : memref<16x32xf32, #tpu.memory_space<vmem>>, vector<16x32xf32>
    %c0_2 = arith.constant 0 : index
    %c0_3 = arith.constant 0 : index
    %4 = vector.load %arg4[%c0_2, %c0_3] : memref<32x96xf32, #tpu.memory_space<vmem>>, vector<32x96xf32>
    %c0_4 = arith.constant 0 : index
    %c0_5 = arith.constant 0 : index
    %5 = vector.load %arg7[%c0_4, %c0_5] : memref<16x96xf32, #tpu.memory_space<vmem>>, vector<16x96xf32>
    %cst = arith.constant dense<0.000000e+00> : vector<16x96xf32>
    %6 = tpu.matmul %3, %4, %cst {dimension_numbers = #tpu.dot_dimension_numbers<[1], [0], [0], [1], [0, 0, 1, 1], [], []>} : vector<16x32xf32>, vector<32x96xf32>, vector<16x96xf32> -> vector<16x96xf32>
    %7 = arith.addf %5, %6 : vector<16x96xf32>
    %c0_6 = arith.constant 0 : index
    %c0_7 = arith.constant 0 : index
    %8 = vector.load %arg7[%c0_6, %c0_7] : memref<16x96xf32, #tpu.memory_space<vmem>>, vector<16x96xf32>
    tpu.vector_store %arg7[%c0_6, %c0_7], %7 {strides = array<i32>} : memref<16x96xf32, #tpu.memory_space<vmem>>, vector<16x96xf32>,
    %c0_i32_8 = arith.constant 0 : i32
    %9 = arith.cmpi eq, %arg2, %c0_i32_8 : i32
    %10 = arith.extui %9 : i1 to i32
    %c0_i32_9 = arith.constant 0 : i32
    %11 = arith.cmpi ne, %10, %c0_i32_9 : i32
    scf.if %11 {
      %c0_10 = arith.constant 0 : index
      %c0_11 = arith.constant 0 : index
      %12 = vector.load %arg7[%c0_10, %c0_11] : memref<16x96xf32, #tpu.memory_space<vmem>>, vector<16x96xf32>
      %c0_12 = arith.constant 0 : index
      %c0_13 = arith.constant 0 : index
      %13 = vector.load %arg5[%c0_12, %c0_13] : memref<1x96xf32, #tpu.memory_space<vmem>>, vector<1x96xf32>
      %14 = vector.broadcast %13 : vector<1x96xf32> to vector<16x96xf32>
      %15 = arith.addf %12, %14 : vector<16x96xf32>
      %c0_14 = arith.constant 0 : index
      %c0_15 = arith.constant 0 : index
      %16 = vector.load %arg6[%c0_14, %c0_15] : memref<16x96xf32, #tpu.memory_space<vmem>>, vector<16x96xf32>
      tpu.vector_store %arg6[%c0_14, %c0_15], %15 {strides = array<i32>} : memref<16x96xf32, #tpu.memory_space<vmem>>, vector<16x96xf32>,
    } else {
    }
    return
  }
  func.func @transform_0(%arg0: i32, %arg1: i32, %arg2: i32) -> (i32, i32) {
    %c0_i32 = arith.constant 0 : i32
    return %arg0, %arg2 : i32, i32
  }
  func.func @transform_1(%arg0: i32, %arg1: i32, %arg2: i32) -> (i32, i32) {
    %c0_i32 = arith.constant 0 : i32
    return %arg2, %arg1 : i32, i32
  }
  func.func @transform_2(%arg0: i32, %arg1: i32, %arg2: i32) -> (i32, i32) {
    %c0_i32 = arith.constant 0 : i32
    %c0_i32_0 = arith.constant 0 : i32
    return %c0_i32, %arg1 : i32, i32
  }
  func.func @transform_3(%arg0: i32, %arg1: i32, %arg2: i32) -> (i32, i32) {
    %c0_i32 = arith.constant 0 : i32
    return %arg0, %arg1 : i32, i32
  }
}

</mosaic_0001>

<bundles_post_ra>
// kernel: tpu_custom_call.1
= control target key start
LH: loop header
LB: loop body
LE: loop exit
PB: predicated region body
PF: predicated region fallthrough
CT: control target
= control target key end

     0   :  { %8 = vsyncpa [#allocation4], 0  ;;  %s274_s0 = inlined_call_operand.hbm [shape: f32[16,32], index: 0, kind: input, shape index: {}]   ;;  %s275_s1 = inlined_call_operand.hbm [shape: f32[32,96], index: 1, kind: input, shape index: {}]   ;;  %s276_s2 = inlined_call_operand.vmem [shape: f32[1,96], index: 2, kind: input, shape index: {}]   ;;  %s277_s3 = inlined_call_operand.hbm [shape: f32[16,96], index: 3, kind: output, shape index: {}]  }
   0x1   :  { %9 = vsyncpa [#allocation7], 0 }
   0x2   :  { %10 = vsyncpa [#allocation5], 0  ;;  %s15_s14 = sshll.u32 %s274_s0, 4  ;;  %s221_s15 = smov [#allocation3]   ;;  %s16_s14 = int_to_ptr.hbm [resolvable:$true] %s15_s14 }
   0x3   :  { %s17_s16 = sshll.u32 %s221_s15, 4  ;;  %s28_s19 = sshll.u32 %s275_s1, 4  ;;  %s18_s16 = int_to_ptr.vmem [resolvable:$true] %s17_s16  ;;  %s29_s19 = int_to_ptr.hbm [resolvable:$true] %s28_s19 }
   0x4   :  { %s222_s20 = smov 128   ;;  %s223_s21 = smov 8  }
   0x5   :  { %23 = dma.hbm_to_vmem [thread:$0]  %s16_s14, 256, %s18_s16, [#allocation4], %s222_s20, %s222_s20, %s223_s21  }
   0x6   :  { %s224_s22 = smov [#allocation6]  }
   0x7   :  { %s30_s23 = sshll.u32 %s224_s22, 4  ;;  %s31_s23 = int_to_ptr.vmem [resolvable:$true] %s30_s23 }
   0x8   :  { %36 = dma.hbm_to_vmem [thread:$0]  %s29_s19, 512, %s31_s23, [#allocation7], %s222_s20, %s222_s20, %s223_s21  }
   0x9   :  { %215 = dma.done.wait [#allocation4], 256  }
   0xa   :  { %216 = vsyncadd [#allocation4], 4294967040 }
   0xb   :  { %217 = dma.done.wait [#allocation7], 512  }
   0xc   :  { %218 = vsyncadd [#allocation7], 4294966784  ;;  %vm51_vm0 = vcmask 785408   ;;  %v225_v0 = vmov 0.0   ;;  %v59_v1 = vld [vmem:[#allocation6 + $0x18] sm:$0xff]  ;;  %v58_v2 = vld [vmem:[#allocation6 + $0x10] sm:$0xff] }
   0xd   :  { %52 = vst.msk [vmem:[#allocation2] sm:$0xff] %vm51_vm0, %v225_v0  ;;  %81 = vmatpush.msra.mxu0 %v59_v1  ;;  %132 = vmatpush.msra.mxu1 %v59_v1  ;;  %v57_v3 = vld [vmem:[#allocation6 + $0x8] sm:$0xff]  ;;  %v56_v4 = vld [vmem:[#allocation6] sm:$0xff]  ;;  %v54_v5 = vld [vmem:[#allocation3] sm:$0xff]  ;;  %vm62_vm1 = vcmask 261120   ;;  %s226_s24 = smov [#allocation8]  }
   0xe   :  { %53 = vst.msk [vmem:[#allocation2 + $0x8] sm:$0xff] %vm51_vm0, %v225_v0  ;;  %v55_v6 = vld [vmem:[#allocation3 + $0x8] sm:$0xff]  ;;  %v142_v13 = vld [vmem:[%s276_s2] ss:$0 sm:$0xff]  ;;  %s114_s25 = sshll.u32 %s226_s24, 4  ;;  %s116_s28 = sshll.u32 %s277_s3, 4  ;;  %s115_s25 = int_to_ptr.vmem [resolvable:$true] %s114_s25  ;;  %s117_s28 = int_to_ptr.hbm [resolvable:$true] %s116_s28 }
   0xf   :  { %82 = vmatpush.msra.mxu0 %v58_v2  ;;  %133 = vmatpush.msra.mxu1 %v58_v2 }
  0x11   :  { %83 = vmatpush.msra.mxu0 %v57_v3  ;;  %134 = vmatpush.msra.mxu1 %v57_v3 }
  0x13   :  { %84 = vmatpush.msra.mxu0 %v56_v4  ;;  %135 = vmatpush.msra.mxu1 %v56_v4 }
  0x14   :  { %130 = vmatmul.msk.f32.vlgmr.msra.gmra.mxu0 %vm62_vm1, %v54_v5  ;;  %131 = vmatmul.msk.f32.vlgmr.msra.gmra.mxu1 %vm62_vm1, %v55_v6  ;;  %v60_v7 = vld [vmem:[#allocation2] sm:$0xff] }
  0x15   :  { %v61_v8 = vld [vmem:[#allocation2 + $0x8] sm:$0xff] }
  0x91   :  { %v86_v9 = vpop.f32.mrf.mxu0  ;;  %v89_v10 = vpop.f32.mrf.mxu1 }
  0x92   :  { %v92_v11 = vadd.f32 %v86_v9, %v60_v7  ;;  %v93_v12 = vadd.f32 %v89_v10, %v61_v8 }
  0x94   :  { %95 = vst.msk [vmem:[#allocation2] sm:$0xff] %vm51_vm0, %v92_v11 }
  0x95   :  { %96 = vst.msk [vmem:[#allocation2 + $0x8] sm:$0xff] %vm51_vm0, %v93_v12 }
  0x9b   :  { %v100_v14 = vld [vmem:[#allocation2] sm:$0xff] }
  0x9c   :  { %v101_v15 = vld [vmem:[#allocation2 + $0x8] sm:$0xff]  ;;  %v106_v16 = vadd.f32 %v142_v13, %v100_v14 }
  0x9d   :  { %v107_v17 = vadd.f32 %v142_v13, %v101_v15 }
  0x9e   :  { %108 = vst.msk [vmem:[#allocation8] sm:$0xff] %vm51_vm0, %v106_v16 }
  0x9f   :  { %109 = vst.msk [vmem:[#allocation8 + $0x8] sm:$0xff] %vm51_vm0, %v107_v17 }
  0xa0   :  { %122 = dma.vmem_to_hbm [thread:$0]  %s115_s25, 256, %s117_s28, [#allocation5], %s222_s20, %s222_s20, %s223_s21  }
  0xa1   :  { %219 = dma.done.wait [#allocation5], 256  }
  0xa2   :  { %220 = vsyncadd [#allocation5], 4294967040 }
  0xa3   :  { %127 = vsyncpa [#allocation4], 1 }
  0xa4   :  { %128 = vsyncpa [#allocation7], 1 }
  0xa5   :  { %129 = vsyncpa [#allocation5], 1 }

</bundles_post_ra>
